<compile_context>
chip_gen: v7x
topology: tpu7x:2x2x1
jax: 0.10.0
libtpu: 0.0.40
codegen_flags: <defaults>
</compile_context>

<pallas_src>
import functools

import jax
import jax.numpy as jnp
from jax.experimental import pallas as pl
from jax.experimental.pallas import tpu as pltpu

H1, H2, H3 = 256, 128, 32
H3P = 128  # hidden layer 3 padded to a full 128-lane tile


def _round_up(n: int, m: int) -> int:
    return ((n + m - 1) // m) * m


def _cdiv(a: int, b: int) -> int:
    return (a + b - 1) // b


def policy_net_kernel(x_ref,
                      w1_ref, b1_ref,
                      w2_ref, b2_ref,
                      w3_ref, b3_ref,
                      wh_ref, bh_ref,
                      out_ref, *, half: int):
    # x: (TB, S) f32  ->  bf16 operand for the MXU, f32 accumulation.
    x = x_ref[...].astype(jnp.bfloat16)

    h = jnp.dot(x, w1_ref[...], preferred_element_type=jnp.float32) + b1_ref[...]
    h = jnp.maximum(h, 0.0).astype(jnp.bfloat16)

    h = jnp.dot(h, w2_ref[...], preferred_element_type=jnp.float32) + b2_ref[...]
    h = jnp.maximum(h, 0.0).astype(jnp.bfloat16)

    # Layer 3 is lane-padded to 128; padded cols have zero weight/bias so
    # ReLU(0)=0 and zero head rows keep the math exact.
    h = jnp.dot(h, w3_ref[...], preferred_element_type=jnp.float32) + b3_ref[...]
    h = jnp.maximum(h, 0.0).astype(jnp.bfloat16)

    # Fused heads: cols [0, half) -> mean head, cols [half, 2*half) -> std head.
    z = jnp.dot(h, wh_ref[...], preferred_element_type=jnp.float32) + bh_ref[...]

    if half % 128 == 0:
        # Lane-aligned halves: run softplus only on the std columns.
        z_mean = z[:, :half]
        z_std = z[:, half:]
        sp = jnp.maximum(z_std, 0.0) + jnp.log1p(jnp.exp(-jnp.abs(z_std)))
        out_ref[:, :half] = z_mean
        out_ref[:, half:] = sp
    else:
        # OUT == 128: halves share vregs; whole-slab softplus + select is free.
        sp = jnp.maximum(z, 0.0) + jnp.log1p(jnp.exp(-jnp.abs(z)))
        cols = jax.lax.broadcasted_iota(jnp.int32, z.shape, 1)
        out_ref[...] = jnp.where(cols >= half, sp, z)


def pack_params(params):
    """One-time weight packing: bf16 casts, padded layer-3, fused head slab."""
    S = params["w1"].shape[0]
    A = params["wm"].shape[1]

    # Lane-padded fused head: 2*HALF is a multiple of 128 -> lane-dense output.
    HALF = _round_up(max(A, 1), 64)
    OUT = 2 * HALF

    # Pad layer 3 to 128 output lanes (zero weights / zero bias in pad cols).
    w3p = jnp.zeros((H2, H3P), jnp.float32).at[:, :H3].set(params["w3"])
    b3p = jnp.zeros((1, H3P), jnp.float32).at[:, :H3].set(params["b3"][0])

    # Fused head weight: rows >= H3 are zero (they multiply the padded,
    # always-zero activations), cols [0,A) = mean head, [HALF,HALF+A) = std.
    wh = jnp.zeros((H3P, OUT), jnp.float32)
    wh = wh.at[:H3, :A].set(params["wm"]).at[:H3, HALF:HALF + A].set(params["ws"])
    bh = jnp.zeros((1, OUT), jnp.float32)
    bh = bh.at[:, :A].set(params["bm"][0]).at[:, HALF:HALF + A].set(params["bs"][0])

    return dict(
        w1=params["w1"].astype(jnp.bfloat16), b1=params["b1"],
        w2=params["w2"].astype(jnp.bfloat16), b2=params["b2"],
        w3=w3p.astype(jnp.bfloat16), b3=b3p,
        wh=wh.astype(jnp.bfloat16), bh=bh,
        state_dim=S, action_dim=A, half=HALF,
    )


def policy_network_forward(x, packed, *, tb: int = 1024):
    """x: (B, state_dim) array. packed: output of pack_params().

    Returns (means, stds), each (B, action_dim) float32.
    """
    x = jnp.asarray(x, jnp.float32)          # matches observation.float()
    B, S = x.shape
    A = packed["action_dim"]
    HALF = packed["half"]
    OUT = 2 * HALF

    # Batch tile: multiple of 8, capped by tb; ensure >=2 grid steps when the
    # batch is large enough so both v7x TensorCores get work.
    B8 = _round_up(B, 8)
    TB = min(tb, B8)
    if B8 >= 16:
        TB = min(TB, _round_up(_cdiv(B8, 2), 8))
    Bp = _round_up(B, TB)
    if Bp != B:
        x = jnp.pad(x, ((0, Bp - B), (0, 0)))

    grid = (Bp // TB,)

    def batch_map(i):
        return (i, 0)

    def resident_map(i):
        return (0, 0)

    in_specs = [
        pl.BlockSpec((TB, S), batch_map),            # x
        pl.BlockSpec((S, H1), resident_map),         # w1
        pl.BlockSpec((1, H1), resident_map),         # b1
        pl.BlockSpec((H1, H2), resident_map),        # w2
        pl.BlockSpec((1, H2), resident_map),         # b2
        pl.BlockSpec((H2, H3P), resident_map),       # w3 (padded)
        pl.BlockSpec((1, H3P), resident_map),        # b3 (padded)
        pl.BlockSpec((H3P, OUT), resident_map),      # fused head weight
        pl.BlockSpec((1, OUT), resident_map),        # fused head bias
    ]
    out_specs = pl.BlockSpec((TB, OUT), batch_map)

    flops = 2 * Bp * (S * H1 + H1 * H2 + H2 * H3P + H3P * OUT)
    transcendentals = 2 * Bp * OUT  # exp + log1p on the std half / slab
    bytes_accessed = (
        Bp * S * 4 + Bp * OUT * 4
        + (S * H1 + H1 * H2 + H2 * H3P + H3P * OUT) * 2
        + (H1 + H2 + H3P + OUT) * 4
    )

    out = pl.pallas_call(
        functools.partial(policy_net_kernel, half=HALF),
        out_shape=jax.ShapeDtypeStruct((Bp, OUT), jnp.float32),
        grid=grid,
        in_specs=in_specs,
        out_specs=out_specs,
        compiler_params=pltpu.CompilerParams(
            dimension_semantics=("parallel",)),
        cost_estimate=pl.CostEstimate(
            flops=flops,
            transcendentals=transcendentals,
            bytes_accessed=bytes_accessed),
    )(x, packed["w1"], packed["b1"], packed["w2"], packed["b2"],
      packed["w3"], packed["b3"], packed["wh"], packed["bh"])

    means = out[:B, :A]
    stds = out[:B, HALF:HALF + A]
    return means, stds


def init_params(key, state_dim, action_dim):
    """Deterministic synthetic init (PyTorch Linear shapes, stored transposed)."""
    ks = jax.random.split(key, 10)

    def lin(kw, kb, fan_in, fan_out):
        bound = 1.0 / jnp.sqrt(fan_in)
        w = jax.random.uniform(kw, (fan_in, fan_out), jnp.float32, -bound, bound)
        b = jax.random.uniform(kb, (1, fan_out), jnp.float32, -bound, bound)
        return w, b

    w1, b1 = lin(ks[0], ks[1], state_dim, H1)
    w2, b2 = lin(ks[2], ks[3], H1, H2)
    w3, b3 = lin(ks[4], ks[5], H2, H3)
    wm, bm = lin(ks[6], ks[7], H3, action_dim)
    ws, bs = lin(ks[8], ks[9], H3, action_dim)
    return dict(w1=w1, b1=b1, w2=w2, b2=b2, w3=w3, b3=b3,
                wm=wm, bm=bm, ws=ws, bs=bs)


def _ref_forward_bf16(x, params):
    """Reference with the same bf16-operand / f32-accumulate matmuls as the kernel."""
    bf = jnp.bfloat16

    def mm(a, w):
        return jnp.dot(a.astype(bf), w.astype(bf),
                       preferred_element_type=jnp.float32)

    h = jnp.maximum(mm(x, params["w1"]) + params["b1"], 0.0)
    h = jnp.maximum(mm(h, params["w2"]) + params["b2"], 0.0)
    h = jnp.maximum(mm(h, params["w3"]) + params["b3"], 0.0)
    means = mm(h, params["wm"]) + params["bm"]
    zs = mm(h, params["ws"]) + params["bs"]
    stds = jnp.maximum(zs, 0.0) + jnp.log1p(jnp.exp(-jnp.abs(zs)))
    return means, stds


def _ref_forward_f32(x, params):
    """Pure-f32 reference matching the original PyTorch math."""
    h = jnp.maximum(x @ params["w1"] + params["b1"], 0.0)
    h = jnp.maximum(h @ params["w2"] + params["b2"], 0.0)
    h = jnp.maximum(h @ params["w3"] + params["b3"], 0.0)
    means = h @ params["wm"] + params["bm"]
    stds = jnp.log1p(jnp.exp(h @ params["ws"] + params["bs"]))
    return means, stds


if __name__ == "__main__":
    key = jax.random.PRNGKey(0)
    k_params, k_x, k_x2 = jax.random.split(key, 3)

    batch, state_dim, action_dim = 8, 8, 4
    params = init_params(k_params, state_dim, action_dim)
    packed = pack_params(params)          # one-time weight packing
    x = jax.random.normal(k_x, (batch, state_dim), jnp.float32)

    means, stds = policy_network_forward(x, packed)
    jax.block_until_ready((means, stds))

    # Exact-path check against a JAX reference using the same bf16 matmul recipe.
    ref_m_bf, ref_s_bf = _ref_forward_bf16(x, params)
    assert jnp.allclose(means, ref_m_bf, atol=1e-3, rtol=1e-3)
    assert jnp.allclose(stds, ref_s_bf, atol=1e-3, rtol=1e-3)

    # Semantics check against the original full-f32 math (bf16 rounding tolerance).
    ref_m, ref_s = _ref_forward_f32(x, params)
    assert jnp.allclose(means, ref_m, atol=3e-2, rtol=3e-2)
    assert jnp.allclose(stds, ref_s, atol=3e-2, rtol=3e-2)

    # Exercise the multi-step (>=2 grid steps) path with a larger batch too.
    xb = jax.random.normal(k_x2, (300, state_dim), jnp.float32)
    mb, sb = policy_network_forward(xb, packed)
    jax.block_until_ready((mb, sb))
    rmb, rsb = _ref_forward_f32(xb, params)
    assert mb.shape == (300, action_dim) and sb.shape == (300, action_dim)
    assert jnp.allclose(mb, rmb, atol=3e-2, rtol=3e-2)
    assert jnp.allclose(sb, rsb, atol=3e-2, rtol=3e-2)

    print("KERNEL_OK")
</pallas_src>

<mosaic_0001>
module attributes {stable_mosaic.version = 11 : i64} {
  func.func @policy_net_kernel(%arg0: i32, %arg1: memref<8x8xf32, #tpu.memory_space<vmem>>, %arg2: memref<8x256xbf16, #tpu.memory_space<vmem>>, %arg3: memref<1x256xf32, #tpu.memory_space<vmem>>, %arg4: memref<256x128xbf16, #tpu.memory_space<vmem>>, %arg5: memref<1x128xf32, #tpu.memory_space<vmem>>, %arg6: memref<128x128xbf16, #tpu.memory_space<vmem>>, %arg7: memref<1x128xf32, #tpu.memory_space<vmem>>, %arg8: memref<128x128xbf16, #tpu.memory_space<vmem>>, %arg9: memref<1x128xf32, #tpu.memory_space<vmem>>, %arg10: memref<8x128xf32, #tpu.memory_space<vmem>>) attributes {dimension_semantics = [#tpu.dimension_semantics<parallel>], iteration_bounds = array<i64: 1>, scalar_prefetch = 0 : i64, scratch_operands = 0 : i64, tpu.core_type = #tpu.core_type<tc>, window_params = [{transform_indices = @transform_0, window_bounds = array<i64: 8, 8>}, {pipeline_mode = #tpu.pipeline_mode<synchronous>, transform_indices = @transform_1, window_bounds = array<i64: 8, 256>}, {pipeline_mode = #tpu.pipeline_mode<synchronous>, transform_indices = @transform_2, window_bounds = array<i64: 1, 256>}, {pipeline_mode = #tpu.pipeline_mode<synchronous>, transform_indices = @transform_3, window_bounds = array<i64: 256, 128>}, {pipeline_mode = #tpu.pipeline_mode<synchronous>, transform_indices = @transform_4, window_bounds = array<i64: 1, 128>}, {pipeline_mode = #tpu.pipeline_mode<synchronous>, transform_indices = @transform_5, window_bounds = array<i64: 128, 128>}, {pipeline_mode = #tpu.pipeline_mode<synchronous>, transform_indices = @transform_6, window_bounds = array<i64: 1, 128>}, {pipeline_mode = #tpu.pipeline_mode<synchronous>, transform_indices = @transform_7, window_bounds = array<i64: 128, 128>}, {pipeline_mode = #tpu.pipeline_mode<synchronous>, transform_indices = @transform_8, window_bounds = array<i64: 1, 128>}, {transform_indices = @transform_9, window_bounds = array<i64: 8, 128>}]} {
    %c0 = arith.constant 0 : index
    %c0_0 = arith.constant 0 : index
    %0 = vector.load %arg1[%c0, %c0_0] : memref<8x8xf32, #tpu.memory_space<vmem>>, vector<8x8xf32>
    %1 = arith.truncf %0 : vector<8x8xf32> to vector<8x8xbf16>
    %c0_1 = arith.constant 0 : index
    %c0_2 = arith.constant 0 : index
    %2 = vector.load %arg2[%c0_1, %c0_2] : memref<8x256xbf16, #tpu.memory_space<vmem>>, vector<8x256xbf16>
    %cst = arith.constant dense<0.000000e+00> : vector<8x256xf32>
    %3 = tpu.matmul %1, %2, %cst {dimension_numbers = #tpu.dot_dimension_numbers<[1], [0], [0], [1], [0, 0, 1, 1], [], []>} : vector<8x8xbf16>, vector<8x256xbf16>, vector<8x256xf32> -> vector<8x256xf32>
    %c0_3 = arith.constant 0 : index
    %c0_4 = arith.constant 0 : index
    %4 = vector.load %arg3[%c0_3, %c0_4] : memref<1x256xf32, #tpu.memory_space<vmem>>, vector<1x256xf32>
    %5 = vector.broadcast %4 : vector<1x256xf32> to vector<8x256xf32>
    %6 = arith.addf %3, %5 : vector<8x256xf32>
    %cst_5 = arith.constant 0.000000e+00 : f32
    %7 = vector.broadcast %cst_5 : f32 to vector<8x256xf32>
    %8 = arith.maximumf %6, %7 : vector<8x256xf32>
    %9 = arith.truncf %8 : vector<8x256xf32> to vector<8x256xbf16>
    %c0_6 = arith.constant 0 : index
    %c0_7 = arith.constant 0 : index
    %10 = vector.load %arg4[%c0_6, %c0_7] : memref<256x128xbf16, #tpu.memory_space<vmem>>, vector<256x128xbf16>
    %cst_8 = arith.constant dense<0.000000e+00> : vector<8x128xf32>
    %11 = tpu.matmul %9, %10, %cst_8 {dimension_numbers = #tpu.dot_dimension_numbers<[1], [0], [0], [1], [0, 0, 1, 1], [], []>} : vector<8x256xbf16>, vector<256x128xbf16>, vector<8x128xf32> -> vector<8x128xf32>
    %c0_9 = arith.constant 0 : index
    %c0_10 = arith.constant 0 : index
    %12 = vector.load %arg5[%c0_9, %c0_10] : memref<1x128xf32, #tpu.memory_space<vmem>>, vector<1x128xf32>
    %13 = vector.broadcast %12 : vector<1x128xf32> to vector<8x128xf32>
    %14 = arith.addf %11, %13 : vector<8x128xf32>
    %cst_11 = arith.constant 0.000000e+00 : f32
    %15 = vector.broadcast %cst_11 : f32 to vector<8x128xf32>
    %16 = arith.maximumf %14, %15 : vector<8x128xf32>
    %17 = arith.truncf %16 : vector<8x128xf32> to vector<8x128xbf16>
    %c0_12 = arith.constant 0 : index
    %c0_13 = arith.constant 0 : index
    %18 = vector.load %arg6[%c0_12, %c0_13] : memref<128x128xbf16, #tpu.memory_space<vmem>>, vector<128x128xbf16>
    %cst_14 = arith.constant dense<0.000000e+00> : vector<8x128xf32>
    %19 = tpu.matmul %17, %18, %cst_14 {dimension_numbers = #tpu.dot_dimension_numbers<[1], [0], [0], [1], [0, 0, 1, 1], [], []>} : vector<8x128xbf16>, vector<128x128xbf16>, vector<8x128xf32> -> vector<8x128xf32>
    %c0_15 = arith.constant 0 : index
    %c0_16 = arith.constant 0 : index
    %20 = vector.load %arg7[%c0_15, %c0_16] : memref<1x128xf32, #tpu.memory_space<vmem>>, vector<1x128xf32>
    %21 = vector.broadcast %20 : vector<1x128xf32> to vector<8x128xf32>
    %22 = arith.addf %19, %21 : vector<8x128xf32>
    %cst_17 = arith.constant 0.000000e+00 : f32
    %23 = vector.broadcast %cst_17 : f32 to vector<8x128xf32>
    %24 = arith.maximumf %22, %23 : vector<8x128xf32>
    %25 = arith.truncf %24 : vector<8x128xf32> to vector<8x128xbf16>
    %c0_18 = arith.constant 0 : index
    %c0_19 = arith.constant 0 : index
    %26 = vector.load %arg8[%c0_18, %c0_19] : memref<128x128xbf16, #tpu.memory_space<vmem>>, vector<128x128xbf16>
    %cst_20 = arith.constant dense<0.000000e+00> : vector<8x128xf32>
    %27 = tpu.matmul %25, %26, %cst_20 {dimension_numbers = #tpu.dot_dimension_numbers<[1], [0], [0], [1], [0, 0, 1, 1], [], []>} : vector<8x128xbf16>, vector<128x128xbf16>, vector<8x128xf32> -> vector<8x128xf32>
    %c0_21 = arith.constant 0 : index
    %c0_22 = arith.constant 0 : index
    %28 = vector.load %arg9[%c0_21, %c0_22] : memref<1x128xf32, #tpu.memory_space<vmem>>, vector<1x128xf32>
    %29 = vector.broadcast %28 : vector<1x128xf32> to vector<8x128xf32>
    %30 = arith.addf %27, %29 : vector<8x128xf32>
    %cst_23 = arith.constant 0.000000e+00 : f32
    %31 = vector.broadcast %cst_23 : f32 to vector<8x128xf32>
    %32 = arith.maximumf %30, %31 : vector<8x128xf32>
    %33 = math.absf %30 : vector<8x128xf32>
    %cst_24 = arith.constant 0.000000e+00 : f32
    %34 = vector.broadcast %cst_24 : f32 to vector<8x128xf32>
    %35 = arith.subf %34, %33 : vector<8x128xf32>
    %36 = math.exp %35 : vector<8x128xf32>
    %37 = math.log1p %36 : vector<8x128xf32>
    %38 = arith.addf %32, %37 : vector<8x128xf32>
    %39 = tpu.iota {dimensions = array<i32: 1>} : vector<8x128xi32>
    %c64_i32 = arith.constant 64 : i32
    %40 = vector.broadcast %c64_i32 : i32 to vector<8x128xi32>
    %41 = arith.cmpi sge, %39, %40 : vector<8x128xi32>
    %42 = arith.select %41, %38, %30 : vector<8x128xi1>, vector<8x128xf32>
    %c0_25 = arith.constant 0 : index
    %c0_26 = arith.constant 0 : index
    %43 = vector.load %arg10[%c0_25, %c0_26] : memref<8x128xf32, #tpu.memory_space<vmem>>, vector<8x128xf32>
    tpu.vector_store %arg10[%c0_25, %c0_26], %42 {strides = array<i32>} : memref<8x128xf32, #tpu.memory_space<vmem>>, vector<8x128xf32>,
    return
  }
  func.func @transform_0(%arg0: i32) -> (i32, i32) {
    %c0_i32 = arith.constant 0 : i32
    %c0_i32_0 = arith.constant 0 : i32
    return %arg0, %c0_i32 : i32, i32
  }
  func.func @transform_1(%arg0: i32) -> (i32, i32) {
    %c0_i32 = arith.constant 0 : i32
    %c0_i32_0 = arith.constant 0 : i32
    %c0_i32_1 = arith.constant 0 : i32
    return %c0_i32, %c0_i32_0 : i32, i32
  }
  func.func @transform_2(%arg0: i32) -> (i32, i32) {
    %c0_i32 = arith.constant 0 : i32
    %c0_i32_0 = arith.constant 0 : i32
    %c0_i32_1 = arith.constant 0 : i32
    return %c0_i32, %c0_i32_0 : i32, i32
  }
  func.func @transform_3(%arg0: i32) -> (i32, i32) {
    %c0_i32 = arith.constant 0 : i32
    %c0_i32_0 = arith.constant 0 : i32
    %c0_i32_1 = arith.constant 0 : i32
    return %c0_i32, %c0_i32_0 : i32, i32
  }
  func.func @transform_4(%arg0: i32) -> (i32, i32) {
    %c0_i32 = arith.constant 0 : i32
    %c0_i32_0 = arith.constant 0 : i32
    %c0_i32_1 = arith.constant 0 : i32
    return %c0_i32, %c0_i32_0 : i32, i32
  }
  func.func @transform_5(%arg0: i32) -> (i32, i32) {
    %c0_i32 = arith.constant 0 : i32
    %c0_i32_0 = arith.constant 0 : i32
    %c0_i32_1 = arith.constant 0 : i32
    return %c0_i32, %c0_i32_0 : i32, i32
  }
  func.func @transform_6(%arg0: i32) -> (i32, i32) {
    %c0_i32 = arith.constant 0 : i32
    %c0_i32_0 = arith.constant 0 : i32
    %c0_i32_1 = arith.constant 0 : i32
    return %c0_i32, %c0_i32_0 : i32, i32
  }
  func.func @transform_7(%arg0: i32) -> (i32, i32) {
    %c0_i32 = arith.constant 0 : i32
    %c0_i32_0 = arith.constant 0 : i32
    %c0_i32_1 = arith.constant 0 : i32
    return %c0_i32, %c0_i32_0 : i32, i32
  }
  func.func @transform_8(%arg0: i32) -> (i32, i32) {
    %c0_i32 = arith.constant 0 : i32
    %c0_i32_0 = arith.constant 0 : i32
    %c0_i32_1 = arith.constant 0 : i32
    return %c0_i32, %c0_i32_0 : i32, i32
  }
  func.func @transform_9(%arg0: i32) -> (i32, i32) {
    %c0_i32 = arith.constant 0 : i32
    %c0_i32_0 = arith.constant 0 : i32
    return %arg0, %c0_i32 : i32, i32
  }
}

</mosaic_0001>

<bundles_post_ra>
// kernel: tpu_custom_call.1
= control target key start
LH: loop header
LB: loop body
LE: loop exit
PB: predicated region body
PF: predicated region fallthrough
CT: control target
= control target key end

     0   :  { %14 = vsyncpa [#allocation3], 0  ;;  %s1094_s0 = inlined_call_operand.hbm [shape: f32[8,8], index: 0, kind: input, shape index: {}]   ;;  %s1095_s1 = inlined_call_operand.hbm [shape: bf16[8,256], index: 1, kind: input, shape index: {}]   ;;  %s1096_s2 = inlined_call_operand.vmem [shape: f32[1,256], index: 2, kind: input, shape index: {}]   ;;  %s1097_s3 = inlined_call_operand.hbm [shape: bf16[256,128], index: 3, kind: input, shape index: {}]   ;;  %s1098_s4 = inlined_call_operand.vmem [shape: f32[1,128], index: 4, kind: input, shape index: {}]   ;;  %s1099_s5 = inlined_call_operand.hbm [shape: bf16[128,128], index: 5, kind: input, shape index: {}]   ;;  %s1100_s6 = inlined_call_operand.vmem [shape: f32[1,128], index: 6, kind: input, shape index: {}]   ;;  %s1101_s7 = inlined_call_operand.hbm [shape: bf16[128,128], index: 7, kind: input, shape index: {}]   ;;  %s1102_s8 = inlined_call_operand.vmem [shape: f32[1,128], index: 8, kind: input, shape index: {}]   ;;  %s1103_s9 = inlined_call_operand.hbm [shape: f32[8,128], index: 9, kind: output, shape index: {}]  }
   0x1   :  { %15 = vsyncpa [#allocation6], 0 }
   0x2   :  { %16 = vsyncpa [#allocation9], 0 }
   0x3   :  { %17 = vsyncpa [#allocation4], 0  ;;  %s920_s30 = smov [#allocation5]   ;;  %s780_s13 = scalar_lea.hbm %s1095_s1, 128 }
   0x4   :  { %s34_s10 = sshll.u32 %s920_s30, 4  ;;  %p781_p0 = scmp.ne.s32.totalorder %s1095_s1, %s780_s13  ;;  %s35_s10 = int_to_ptr.vmem [resolvable:$true] %s34_s10 }
   0x5   :  { %p784_p1 = scmp.lt.u32.totalorder %s780_s13, %s1095_s1 }
   0x7   :  { %p786_p2 = pnand %p784_p1, %p781_p0 }
   0x9   :  { %789 = shalt.err (!%p786_p2)
}
   0xa   :  { %s790_s18 = scalar_lea.vmem %s35_s10, 128  ;;  %p795_p4 = scmp.lt.s32.totalorder %s35_s10, %s35_s10 }
   0xb   :  { %p791_p3 = scmp.ne.s32.totalorder %s35_s10, %s790_s18  ;;  %p796_p5 = scmp.lt.s32.totalorder %s790_s18, %s790_s18 }
   0xd   :  { %p797_p6 = por %p796_p5, %p795_p4 }
   0xf   :  { %p798_p7 = pnand %p797_p6, %p791_p3 }
  0x11   :  { %801 = shalt.err (!%p798_p7)
}
  0x12   :  { %37 = dma.hbm_to_vmem [thread:$0]  %s1095_s1, 128, %s35_s10, [#allocation6]  }
  0x13   :  { %s921_s21 = smov [#allocation8]   ;;  %s922_s23 = smov [#allocation2]  }
  0x14   :  { %s59_s22 = sshll.u32 %s921_s21, 4  ;;  %s24_s24 = sshll.u32 %s922_s23, 4  ;;  %s60_s22 = int_to_ptr.vmem [resolvable:$true] %s59_s22  ;;  %s25_s24 = int_to_ptr.vmem [resolvable:$true] %s24_s24 }
  0x15   :  { %s802_s27 = scalar_lea.hbm %s1099_s5, 1024 }
  0x16   :  { %p803_p8 = scmp.ne.s32.totalorder %s1099_s5, %s802_s27  ;;  %p806_p9 = scmp.lt.u32.totalorder %s802_s27, %s1099_s5 }
  0x18   :  { %p808_p10 = pnand %p806_p9, %p803_p8 }
  0x1a   :  { %811 = shalt.err (!%p808_p10)
}
  0x1b   :  { %s812_s1 = scalar_lea.vmem %s60_s22, 1024  ;;  %p817_p12 = scmp.lt.s32.totalorder %s60_s22, %s60_s22 }
  0x1c   :  { %p813_p11 = scmp.ne.s32.totalorder %s60_s22, %s812_s1  ;;  %p818_p13 = scmp.lt.s32.totalorder %s812_s1, %s812_s1 }
  0x1e   :  { %p819_p0 = por %p818_p13, %p817_p12 }
  0x20   :  { %p820_p1 = pnand %p819_p0, %p813_p11 }
  0x22   :  { %823 = shalt.err (!%p820_p1)
}
  0x23   :  { %s923_s10 = smov 64   ;;  %s924_s12 = smov 4  }
  0x24   :  { %65 = dma.hbm_to_vmem [thread:$0]  %s1099_s5, 1024, %s60_s22, [#allocation9], %s923_s10, %s923_s10, %s924_s12  }
  0x25   :  { %s824_s17 = scalar_lea.hbm %s1094_s0, 128 }
  0x26   :  { %p825_p2 = scmp.ne.s32.totalorder %s1094_s0, %s824_s17  ;;  %p828_p3 = scmp.lt.u32.totalorder %s824_s17, %s1094_s0 }
  0x28   :  { %p830_p4 = pnand %p828_p3, %p825_p2 }
  0x2a   :  { %833 = shalt.err (!%p830_p4)
}
  0x2b   :  { %s834_s23 = scalar_lea.vmem %s25_s24, 128  ;;  %p839_p6 = scmp.lt.s32.totalorder %s25_s24, %s25_s24 }
  0x2c   :  { %p835_p5 = scmp.ne.s32.totalorder %s25_s24, %s834_s23  ;;  %p840_p7 = scmp.lt.s32.totalorder %s834_s23, %s834_s23 }
  0x2e   :  { %p841_p8 = por %p840_p7, %p839_p6 }
  0x30   :  { %p842_p9 = pnand %p841_p8, %p835_p5 }
  0x32   :  { %845 = shalt.err (!%p842_p9)
}
  0x33   :  { %27 = dma.hbm_to_vmem [thread:$0]  %s1094_s0, 128, %s25_s24, [#allocation3]  }
  0x34   :  { %s925_s25 = smov [#allocation7]   ;;  %s926_s27 = smov [#allocation10]  }
  0x35   :  { %s45_s26 = sshll.u32 %s925_s25, 4  ;;  %s73_s28 = sshll.u32 %s926_s27, 4  ;;  %s46_s26 = int_to_ptr.vmem [resolvable:$true] %s45_s26  ;;  %s74_s28 = int_to_ptr.vmem [resolvable:$true] %s73_s28 }
  0x36   :  { %s846_s11 = scalar_lea.hbm %s1097_s3, 2048 }
  0x37   :  { %p847_p10 = scmp.ne.s32.totalorder %s1097_s3, %s846_s11  ;;  %p850_p11 = scmp.lt.u32.totalorder %s846_s11, %s1097_s3 }
  0x39   :  { %p852_p12 = pnand %p850_p11, %p847_p10 }
  0x3b   :  { %855 = shalt.err (!%p852_p12)
}
  0x3c   :  { %s856_s0 = scalar_lea.vmem %s46_s26, 2048  ;;  %p861_p0 = scmp.lt.s32.totalorder %s46_s26, %s46_s26 }
  0x3d   :  { %p857_p13 = scmp.ne.s32.totalorder %s46_s26, %s856_s0  ;;  %p862_p1 = scmp.lt.s32.totalorder %s856_s0, %s856_s0 }
  0x3f   :  { %p863_p2 = por %p862_p1, %p861_p0 }
  0x41   :  { %p864_p3 = pnand %p863_p2, %p857_p13 }
  0x43   :  { %867 = shalt.err (!%p864_p3)
}
  0x44   :  { %51 = dma.hbm_to_vmem [thread:$0]  %s1097_s3, 2048, %s46_s26, [#allocation6], %s923_s10, %s923_s10, %s924_s12  }
  0x45   :  { %s868_s19 = scalar_lea.hbm %s1101_s7, 1024 }
  0x46   :  { %p869_p4 = scmp.ne.s32.totalorder %s1101_s7, %s868_s19  ;;  %p872_p5 = scmp.lt.u32.totalorder %s868_s19, %s1101_s7 }
  0x48   :  { %p874_p6 = pnand %p872_p5, %p869_p4 }
  0x4a   :  { %877 = shalt.err (!%p874_p6)
}
  0x4b   :  { %s878_s22 = scalar_lea.vmem %s74_s28, 1024  ;;  %p883_p8 = scmp.lt.s32.totalorder %s74_s28, %s74_s28 }
  0x4c   :  { %p879_p7 = scmp.ne.s32.totalorder %s74_s28, %s878_s22  ;;  %p884_p9 = scmp.lt.s32.totalorder %s878_s22, %s878_s22 }
  0x4e   :  { %p885_p10 = por %p884_p9, %p883_p8 }
  0x50   :  { %p886_p11 = pnand %p885_p10, %p879_p7 }
  0x52   :  { %889 = shalt.err (!%p886_p11)
}
  0x53   :  { %79 = dma.hbm_to_vmem [thread:$0]  %s1101_s7, 1024, %s74_s28, [#allocation9], %s923_s10, %s923_s10, %s924_s12  }
  0x54   :  { %912 = dma.done.wait [#allocation3], 128  }
  0x55   :  { %913 = vsyncadd [#allocation3], 4294967168 }
  0x56   :  { %914 = dma.done.wait [#allocation6], 2176  }
  0x57   :  { %915 = vsyncadd [#allocation6], 4294965120 }
  0x58   :  { %916 = dma.done.wait [#allocation9], 2048  }
  0x59   :  { %917 = vsyncadd [#allocation9], 4294965248  ;;  %v927_v0 = vmov 0   ;;  %v100_v1 = vld [vmem:[#allocation5] sm:$0xff]  ;;  %vm122_vm0 = vcmask 1043456   ;;  %v98_v2 = vld [vmem:[#allocation2] sm:$0xff]  ;;  %v103_v30 = vlaneseq }
  0x5a   :  { %161 = vmatprep.mubr.bf16.mxu0 %v927_v0  ;;  %v613_v3 = vcombine.high %v100_v1, %v100_v1  ;;  %v612_v4 = vcombine.low %v100_v1, %v100_v1  ;;  %v744_v5 = vld [vmem:[#allocation7 + $0x40] sm:$0xff]   ;;  %v99_v8 = vpack.c.bf16 %v98_v2, %v98_v2  ;;  %v746_v9 = vld [vmem:[#allocation7 + $0x48] sm:$0xff]   ;;  %vm118_vm1 = vcmask 64512   ;;  %v748_v11 = vld [vmem:[#allocation7 + $0x50] sm:$0xff]  }
  0x5b   :  { %v745_v6 = vld [vmem:[#allocation7] sm:$0xff]   ;;  %651 = vmatprep.subr.bf16.mxu1 %v744_v5  ;;  %v747_v10 = vld [vmem:[#allocation7 + $0x8] sm:$0xff]   ;;  %v749_v12 = vld [vmem:[#allocation7 + $0x10] sm:$0xff]   ;;  %v928_v24 = vmov 0.0   ;;  %v104_v31 = vshrl.u32 %v103_v30, 7  ;;  %vm929_vm2 = vmmov 0  }
  0x5c   :  { %614 = vmatprep.subr.msk.bf16.mxu0 %vm122_vm0, %v613_v3  ;;  %v124_v7 = vsel %vm122_vm0, %v612_v4, 0  ;;  %652 = vmatpush3.bf16.msra.mxu1 %v745_v6  ;;  %v750_v13 = vld [vmem:[#allocation7 + $0x58] sm:$0xff]   ;;  %v752_v15 = vld [vmem:[#allocation7 + $0x60] sm:$0xff]   ;;  %v754_v17 = vld [vmem:[#allocation7 + $0x68] sm:$0xff]  }
  0x5d   :  { %130 = vmatpush1.bf16.msra.mxu0 %v124_v7  ;;  %653 = vmatprep.subr.bf16.mxu1 %v746_v9  ;;  %v751_v14 = vld [vmem:[#allocation7 + $0x18] sm:$0xff]   ;;  %v753_v16 = vld [vmem:[#allocation7 + $0x20] sm:$0xff]   ;;  %v755_v18 = vld [vmem:[#allocation7 + $0x28] sm:$0xff]   ;;  %v105_v32 = vsub.s32 0, %v104_v31  ;;  %v109_v34 = vsub.s32 1, %v104_v31 }
  0x5e   :  { %v756_v19 = vld [vmem:[#allocation7 + $0x70] sm:$0xff]   ;;  %v758_v21 = vld [vmem:[#allocation7 + $0x78] sm:$0xff]   ;;  %v760_v23 = vld [vmem:[#allocation8] sm:$0xff]   ;;  %691 = vmatprep.subr.bf16.mxu0 %v928_v24 }
  0x5f   :  { %v757_v20 = vld [vmem:[#allocation7 + $0x30] sm:$0xff]   ;;  %v759_v22 = vld [vmem:[#allocation7 + $0x38] sm:$0xff]   ;;  %v761_v25 = vld [vmem:[#allocation8 + $0x8] sm:$0xff]  }
  0x60   :  { %615 = vmatmul.mubr.msk.bf16.vlgmr.msra.gmra.mrb[0].mxu0 %vm118_vm1, %v99_v8  ;;  %654 = vmatpush3.bf16.msra.mxu1 %v747_v10  ;;  %v762_v26 = vld [vmem:[#allocation8 + $0x10] sm:$0xff]   ;;  %v763_v27 = vld [vmem:[#allocation8 + $0x18] sm:$0xff]   ;;  %v764_v28 = vld [vmem:[#allocation8 + $0x20] sm:$0xff]  }
  0x61   :  { %655 = vmatprep.subr.bf16.mxu1 %v748_v11  ;;  %692 = vmatpush3.bf16.msra.mxu0 %v760_v23  ;;  %v765_v29 = vld [vmem:[#allocation8 + $0x28] sm:$0xff]   ;;  %v101_v33 = vld [vmem:[%s1096_s2] sm:$0x3]  ;;  %v767_v48 = vld [vmem:[#allocation8 + $0x38] sm:$0xff]  }
  0x62   :  { %693 = vmatprep.subr.bf16.mxu0 %v928_v24  ;;  %v106_v35 = vrot.slane %v101_v33, %v105_v32  ;;  %v110_v36 = vrot.slane %v101_v33, %v109_v34  ;;  %v766_v47 = vld [vmem:[#allocation8 + $0x30] sm:$0xff]   ;;  %707 = vmatprep.mubr.msk.bf16.mxu0 %vm929_vm2, %v928_v24  ;;  %v768_v49 = vld [vmem:[#allocation10] sm:$0xff]   ;;  %v769_v50 = vld [vmem:[#allocation10 + $0x8] sm:$0xff]  }
  0x63   :  { %v770_v51 = vld [vmem:[#allocation10 + $0x10] sm:$0xff]   ;;  %v771_v52 = vld [vmem:[#allocation10 + $0x18] sm:$0xff]   ;;  %v772_v53 = vld [vmem:[#allocation10 + $0x20] sm:$0xff]  }
  0x64   :  { %656 = vmatpush3.bf16.msra.mxu1 %v749_v12  ;;  %v773_v54 = vld [vmem:[#allocation10 + $0x28] sm:$0xff]   ;;  %v616_v56 = vld [vmem:[%s1098_s4] ss:$0 sm:$0xff]  ;;  %v775_v1 = vld [vmem:[#allocation10 + $0x38] sm:$0xff]  }
  0x65   :  { %657 = vmatprep.subr.bf16.mxu1 %v750_v13  ;;  %694 = vmatpush3.bf16.msra.mxu0 %v761_v25  ;;  %v774_v0 = vld [vmem:[#allocation10 + $0x30] sm:$0xff]  }
  0x66   :  { %695 = vmatprep.subr.bf16.mxu0 %v928_v24  ;;  %v633_v2 = vld [vmem:[%s1100_s6] ss:$0 sm:$0xff]  ;;  %s930_s6 = smov [#allocation11]  }
  0x67   :  { %v642_v10 = vld [vmem:[%s1102_s8] ss:$0 sm:$0xff]  ;;  %s601_s8 = sshll.u32 %s930_s6, 4  ;;  %s602_s8 = int_to_ptr.vmem [resolvable:$true] %s601_s8 }
  0x68   :  { %658 = vmatpush3.bf16.msra.mxu1 %v751_v14  ;;  %s890_s29 = scalar_lea.vmem %s602_s8, 128  ;;  %p895_p13 = scmp.lt.s32.totalorder %s602_s8, %s602_s8 }
  0x69   :  { %659 = vmatprep.subr.bf16.mxu1 %v752_v15  ;;  %696 = vmatpush3.bf16.msra.mxu0 %v762_v26  ;;  %p891_p12 = scmp.ne.s32.totalorder %s602_s8, %s890_s29  ;;  %p896_p0 = scmp.lt.s32.totalorder %s890_s29, %s890_s29 }
  0x6a   :  { %697 = vmatprep.subr.bf16.mxu0 %v928_v24 }
  0x6b   :  { %p897_p1 = por %p896_p0, %p895_p13 }
  0x6c   :  { %660 = vmatpush3.bf16.msra.mxu1 %v753_v16 }
  0x6d   :  { %661 = vmatprep.subr.bf16.mxu1 %v754_v17  ;;  %698 = vmatpush3.bf16.msra.mxu0 %v763_v27  ;;  %p898_p2 = pnand %p897_p1, %p891_p12 }
  0x6e   :  { %699 = vmatprep.subr.bf16.mxu0 %v928_v24 }
  0x70   :  { %662 = vmatpush3.bf16.msra.mxu1 %v755_v18 }
  0x71   :  { %663 = vmatprep.subr.bf16.mxu1 %v756_v19  ;;  %700 = vmatpush3.bf16.msra.mxu0 %v764_v28 }
  0x72   :  { %701 = vmatprep.subr.bf16.mxu0 %v928_v24 }
  0x74   :  { %664 = vmatpush3.bf16.msra.mxu1 %v757_v20 }
  0x75   :  { %665 = vmatprep.subr.bf16.mxu1 %v758_v21  ;;  %702 = vmatpush3.bf16.msra.mxu0 %v765_v29 }
  0x76   :  { %703 = vmatprep.subr.bf16.mxu0 %v928_v24 }
  0x78   :  { %666 = vmatpush3.bf16.msra.mxu1 %v759_v22 }
  0x79   :  { %711 = vmatprep.subr.bf16.mxu1 %v928_v24  ;;  %704 = vmatpush3.bf16.msra.mxu0 %v766_v47 }
  0x7a   :  { %705 = vmatprep.subr.bf16.mxu0 %v928_v24 }
  0x7d   :  { %706 = vmatpush3.bf16.msra.mxu0 %v767_v48 }
 0x133   :  { %v163_v37 = vpop.f32.mrb[0].mxu0 }
 0x134   :  { %v164_v38 = vadd.f32 %v163_v37, %v106_v35  ;;  %v165_v39 = vpop.f32.mrb[1].mxu0 }
 0x135   :  { %v166_v40 = vadd.f32 %v165_v39, %v110_v36  ;;  %v167_v41 = vpop.f32.mrb[2].mxu0 }
 0x136   :  { %v170_v42 = vmax.f32 %v164_v38, 0.0  ;;  %v168_v43 = vpop.f32.mrb[3].mxu0 }
 0x137   :  { %v171_v44 = vmax.f32 %v166_v40, 0.0 }
 0x138   :  { %v172_v46 = vpack.c.bf16 %v170_v42, %v170_v42 }
 0x139   :  { %v173_v45 = vpack.c.bf16 %v171_v44, %v171_v44 }
 0x13b   :  { %341 = vmatprep.mubr.bf16.mxu1 %v173_v45 }
 0x13c   :  { %342 = vmatmul.mubr.bf16.vlgmr.msra.gmra.mrb[0].mxu1 %v172_v46 }
 0x13d   :  { %727 = vmatprep.mubr.msk.bf16.mxu1 %vm929_vm2, %v928_v24  ;;  %712 = vmatpush3.bf16.msra.mxu1 %v768_v49 }
 0x13e   :  { %713 = vmatprep.subr.bf16.mxu1 %v928_v24 }
 0x141   :  { %714 = vmatpush3.bf16.msra.mxu1 %v769_v50 }
 0x142   :  { %715 = vmatprep.subr.bf16.mxu1 %v928_v24 }
 0x145   :  { %716 = vmatpush3.bf16.msra.mxu1 %v770_v51 }
 0x146   :  { %717 = vmatprep.subr.bf16.mxu1 %v928_v24 }
 0x149   :  { %718 = vmatpush3.bf16.msra.mxu1 %v771_v52 }
 0x14a   :  { %719 = vmatprep.subr.bf16.mxu1 %v928_v24 }
 0x14d   :  { %720 = vmatpush3.bf16.msra.mxu1 %v772_v53 }
 0x14e   :  { %721 = vmatprep.subr.bf16.mxu1 %v928_v24 }
 0x151   :  { %722 = vmatpush3.bf16.msra.mxu1 %v773_v54 }
 0x152   :  { %723 = vmatprep.subr.bf16.mxu1 %v928_v24 }
 0x155   :  { %724 = vmatpush3.bf16.msra.mxu1 %v774_v0 }
 0x156   :  { %725 = vmatprep.subr.bf16.mxu1 %v928_v24  ;;  %v591_v24 = vand.u32 127, %v103_v30 }
 0x158   :  { %vm592_vm4 = vcmp.ge.s32.totalorder %v591_v24, 64 }
 0x159   :  { %726 = vmatpush3.bf16.msra.mxu1 %v775_v1 }
 0x20f   :  { %v667_v55 = vpop.f32.mrb[0].mxu1 }
 0x210   :  { %v668_v57 = vpop.f32.mrb[1].mxu1 }
 0x211   :  { %v669_v58 = vadd.f32 %v668_v57, %v667_v55  ;;  %v670_v59 = vpop.f32.mrb[2].mxu1 }
 0x212   :  { %v671_v60 = vpop.f32.mrb[3].mxu1 }
 0x213   :  { %v344_v61 = vadd.f32 %v669_v58, %v616_v56 }
 0x215   :  { %v349_v62 = vmax.f32 %v344_v61, 0.0 }
 0x217   :  { %v350_v63 = vpack.c.bf16 %v349_v62, %v349_v62 }
 0x219   :  { %708 = vmatmul.mubr.bf16.vlgmr.msra.gmra.mrb[4].mxu0 %v350_v63 }
 0x2ec   :  { %v456_v3 = vpop.f32.mrb[4].mxu0 }
 0x2ed   :  { %v457_v4 = vadd.f32 %v633_v2, %v456_v3  ;;  %v709_v5 = vpop.f32.mrb[5].mxu0 }
 0x2ee   :  { %v459_v6 = vpop.f32.mrb[6].mxu0 }
 0x2ef   :  { %v462_v7 = vmax.f32 %v457_v4, 0.0  ;;  %v710_v8 = vpop.f32.mrb[7].mxu0 }
 0x2f1   :  { %v463_v9 = vpack.c.bf16 %v462_v7, %v462_v7 }
 0x2f3   :  { %728 = vmatmul.mubr.bf16.vlgmr.msra.gmra.mrb[4].mxu1 %v463_v9 }
 0x3c6   :  { %v569_v11 = vpop.f32.mrb[4].mxu1 }
 0x3c7   :  { %v570_v12 = vadd.f32 %v642_v10, %v569_v11  ;;  %v729_v13 = vpop.f32.mrb[5].mxu1 }
 0x3c8   :  { %v572_v14 = vpop.f32.mrb[6].mxu1 }
 0x3c9   :  { %v576_v15 = vand.u32 2147483647, %v570_v12  ;;  %v730_v16 = vpop.f32.mrb[7].mxu1  ;;  %v575_v28 = vmax.f32 %v570_v12, 0.0 }
 0x3cb   :  { %v577_v17 = vsub.f32 0.0, %v576_v15 }
 0x3cd   :  { %v578_v18 = vmul.f32 1.442695, %v577_v17 }
 0x3cf   :  { %776 = vpow2.f32 %v578_v18 }
 0x3d9   :  { %v777_v19 = vpop.eup %776 }
 0x3da   :  { %v580_v20 = vadd.f32 1.0, %v777_v19  ;;  %v583_v21 = vmul.f32 -0.5, %v777_v19  ;;  %v586_v23 = vand.u32 2147483647, %v777_v19 }
 0x3dc   :  { %778 = vlog2.f32 %v580_v20  ;;  %v584_v22 = vadd.f32 1.0, %v583_v21  ;;  %vm587_vm3 = vcmp.lt.f32.partialorder %v586_v23, 0.0004427343 }
 0x3de   :  { %v585_v27 = vmul.f32 %v777_v19, %v584_v22 }
 0x3e6   :  { %v779_v25 = vpop.eup %778 }
 0x3e7   :  { %v582_v26 = vmul.f32 0.6931472, %v779_v25 }
 0x3e9   :  { %v588_v29 = vsel %vm587_vm3, %v585_v27, %v582_v26 }
 0x3ea   :  { %v589_v31 = vadd.f32 %v588_v29, %v575_v28 }
 0x3ec   :  { %v593_v32 = vsel %vm592_vm4, %v589_v31, %v570_v12 }
 0x3ed   :  { %594 = vst [vmem:[#allocation11] sm:$0xff] %v593_v32 }
 0x3ee   :  { %901 = shalt.err (!%p898_p2)
}
 0x3ef   :  { %s902_s1 = scalar_lea.hbm %s1103_s9, 128 }
 0x3f0   :  { %p903_p3 = scmp.ne.s32.totalorder %s1103_s9, %s902_s1  ;;  %p906_p4 = scmp.lt.u32.totalorder %s902_s1, %s1103_s9 }
 0x3f2   :  { %p908_p5 = pnand %p906_p4, %p903_p3 }
 0x3f4   :  { %911 = shalt.err (!%p908_p5)
}
 0x3f5   :  { %604 = dma.vmem_to_hbm [thread:$0]  %s602_s8, 128, %s1103_s9, [#allocation4]  }
 0x3f6   :  { %918 = dma.done.wait [#allocation4], 128  }
 0x3f7   :  { %919 = vsyncadd [#allocation4], 4294967168 }
 0x3f8   :  { %608 = vsyncpa [#allocation3], 1 }
 0x3f9   :  { %609 = vsyncpa [#allocation6], 1 }
 0x3fa   :  { %610 = vsyncpa [#allocation9], 1 }
 0x3fb   :  { %611 = vsyncpa [#allocation4], 1 }

</bundles_post_ra>
